<compile_context>
chip_gen: v7x
topology: tpu7x:2x2x1
jax: 0.10.0
libtpu: 0.0.40
codegen_flags: <defaults>
</compile_context>

<pallas_src>
import functools

import jax
import jax.numpy as jnp
from jax.experimental import pallas as pl
from jax.experimental.pallas import tpu as pltpu


# --------------------------------------------------------------------------- #
# Fused kernel: the whole bottleneck block for a small batch tile per grid
# step.  Layout inside the kernel: (channels, H*W_padded) -> channels on
# sublanes, flattened spatial on lanes.
# --------------------------------------------------------------------------- #
def _bottleneck_kernel(x_ref, w1_ref, b1_ref, w2_ref, b2_ref, w3_ref, b3_ref,
                       m_ref, o_ref, *, W, B_tile):
    # Grid-invariant operands: load once per grid step.
    w1 = w1_ref[...]                     # (Cmid, Cin)       compute dtype
    w2 = w2_ref[...]                     # (Cmid, 9*Cmid)    compute dtype
    w3 = w3_ref[...]                     # (Cout, Cmid)      compute dtype
    b1 = b1_ref[...]                     # (Cmid, 1) f32
    b2 = b2_ref[...]                     # (Cmid, 1) f32
    b3 = b3_ref[...]                     # (Cout, 1) f32
    m = m_ref[...]                       # (9, HWp)  f32 tap-validity masks

    # B_tile is a small static constant; per-image bodies are independent.
    for img in range(B_tile):
        x = x_ref[img]                   # (Cin, HWp), compute dtype
        cdt = x.dtype
        L = x.shape[1]

        # ---- stage 1: 1x1 conv (BN scale folded into w1) + bias + ReLU ---- #
        h1f = jnp.maximum(
            jnp.dot(w1, x, preferred_element_type=jnp.float32) + b1, 0.0)

        # ---- stage 2: 3x3 conv (stride=1, pad=1) as ONE MXU matmul -------- #
        # Tap (ky,kx) of output pixel p reads input pixel p + (ky-1)*W+(kx-1).
        # The shift is a static lane rotation (XLU, off the VALU/MXU slots);
        # out-of-image taps are zeroed with the precomputed per-tap mask.  The
        # 9 shifted+masked activations are stacked along the contraction dim
        # and contracted in a single dot (K = 9*Cmid), so there is no serial
        # VALU accumulation chain and the MXU K depth is filled.
        taps = []
        for ky in range(3):
            for kx in range(3):
                s = (ky - 1) * W + (kx - 1)
                if s == 0:
                    taps.append(h1f)                      # center tap: no mask
                else:
                    r = pltpu.roll(h1f, shift=(-s) % L, axis=1)   # [p]=h1[p+s]
                    t = ky * 3 + kx
                    taps.append(r * m[t:t + 1, :])
        t_all = jnp.concatenate(taps, axis=0).astype(cdt)  # (9*Cmid, HWp)
        h2f = jnp.maximum(
            jnp.dot(w2, t_all, preferred_element_type=jnp.float32) + b2, 0.0)

        # ---- stage 3: 1x1 conv + bias + residual add + ReLU --------------- #
        h3 = jnp.dot(w3, h2f.astype(cdt), preferred_element_type=jnp.float32)
        out = jnp.maximum(h3 + b3 + x.astype(jnp.float32), 0.0)
        o_ref[img] = out.astype(o_ref.dtype)


# --------------------------------------------------------------------------- #
# Host-side helpers
# --------------------------------------------------------------------------- #
def _fold_bn(gamma, beta, mean, var, conv_bias, eps=1e-5):
    """BN(conv(x)+b) == scale*conv(x) + bias with these folded scale/bias."""
    scale = gamma / jnp.sqrt(var + eps)
    bias = (conv_bias - mean) * scale + beta
    return scale, bias


def _tap_masks(h, w, hwp):
    """(9, hwp) f32 validity mask for each 3x3 tap (zero padding).

    Padded lane tail (positions >= h*w) is fully masked so rolled reads that
    land there never contribute to valid outputs.
    """
    ys, xs = jnp.meshgrid(jnp.arange(h), jnp.arange(w), indexing="ij")
    ys = ys.reshape(h * w)
    xs = xs.reshape(h * w)
    rows = []
    for ky in range(3):
        for kx in range(3):
            dy, dx = ky - 1, kx - 1
            valid = ((ys + dy >= 0) & (ys + dy < h) &
                     (xs + dx >= 0) & (xs + dx < w))
            rows.append(valid)
    m = jnp.stack(rows).astype(jnp.float32)          # (9, h*w)
    if hwp != h * w:
        m = jnp.pad(m, ((0, 0), (0, hwp - h * w)))
    return m


def _pick_batch_tile(n, per_image_bytes, budget=8 << 20):
    """Largest batch tile under a VMEM budget, keeping >=2 grid steps."""
    bt = max(1, min(n, budget // max(per_image_bytes, 1)))
    if n >= 2:
        bt = max(1, min(bt, n // 2))     # keep grid length >= 2 (v7x: 2 TCs)
    while n % bt:
        bt -= 1
    return bt


def block_forward(x_nchw, params, *, batch_tile=None):
    """Forward pass of the bottleneck block (inference BN).  NCHW in/out."""
    n, cin, h, w = x_nchw.shape
    cmid = params["w1"].shape[0]
    cout = params["w3"].shape[0]
    assert cin == cout, "residual add requires in_channels == out_channels*4"

    cdt = x_nchw.dtype                   # compute dtype (f32 or bf16)
    itemsize = jnp.dtype(cdt).itemsize

    # BN folded into the conv weights once, outside the hot path.
    s1, b1 = _fold_bn(*params["bn1"], params["b1"])
    s2, b2 = _fold_bn(*params["bn2"], params["b2"])
    s3, b3 = _fold_bn(*params["bn3"], params["b3"])
    w1 = (params["w1"] * s1[:, None]).astype(cdt)                 # (Cmid, Cin)
    w2s = params["w2"] * s2[None, None, :, None]                  # (3,3,o,i)
    # Lane-dense, tap-major flattening: column block t*Cmid:(t+1)*Cmid is tap
    # t = ky*3+kx -- must match the concat order inside the kernel.
    w2f = jnp.transpose(w2s, (2, 0, 1, 3)).reshape(cmid, 9 * cmid).astype(cdt)
    w3 = (params["w3"] * s3[:, None]).astype(cdt)                 # (Cout, Cmid)
    b1c = b1.reshape(cmid, 1).astype(jnp.float32)
    b2c = b2.reshape(cmid, 1).astype(jnp.float32)
    b3c = b3.reshape(cout, 1).astype(jnp.float32)

    # Lane-dense spatial axis: pad H*W up to a multiple of 128 (dense vst).
    hw = h * w
    hwp = ((hw + 127) // 128) * 128
    x3 = x_nchw.reshape(n, cin, hw)      # trailing-dim merge, no copy
    if hwp != hw:
        x3 = jnp.pad(x3, ((0, 0), (0, 0), (0, hwp - hw)))   # zero tail
    masks = _tap_masks(h, w, hwp)        # (9, hwp) f32

    if batch_tile is None:
        per_image = (cin + cout + 12 * cmid) * hwp * 4
        batch_tile = _pick_batch_tile(n, per_image)
    assert n % batch_tile == 0
    grid = (n // batch_tile,)

    # VMEM budget hint (double-buffered IO + weights + live intermediates).
    wbytes = int((w1.size + w2f.size + w3.size) * itemsize)
    io_bytes = int(batch_tile * (cin + cout) * hwp * itemsize)
    live_bytes = int(12 * cmid * hwp * 4)
    step_bytes = 2 * io_bytes + 2 * wbytes + 2 * int(masks.size) * 4 + live_bytes
    vmem_limit = int(min(100 << 20, max(32 << 20, 2 * step_bytes)))

    flops = int(2 * n * hw * (cin * cmid + 9 * cmid * cmid + cmid * cout))
    bytes_accessed = int(n * (cin + cout) * hwp * itemsize + wbytes
                         + masks.size * 4 + (2 * cmid + cout) * 4)

    kernel = functools.partial(_bottleneck_kernel, W=w, B_tile=batch_tile)
    out3 = pl.pallas_call(
        kernel,
        out_shape=jax.ShapeDtypeStruct((n, cout, hwp), cdt),
        grid=grid,
        in_specs=[
            pl.BlockSpec((batch_tile, cin, hwp), lambda b: (b, 0, 0)),  # x
            pl.BlockSpec((cmid, cin), lambda b: (0, 0)),                # w1
            pl.BlockSpec((cmid, 1), lambda b: (0, 0)),                  # b1
            pl.BlockSpec((cmid, 9 * cmid), lambda b: (0, 0)),           # w2 flat
            pl.BlockSpec((cmid, 1), lambda b: (0, 0)),                  # b2
            pl.BlockSpec((cout, cmid), lambda b: (0, 0)),               # w3
            pl.BlockSpec((cout, 1), lambda b: (0, 0)),                  # b3
            pl.BlockSpec((9, hwp), lambda b: (0, 0)),                   # masks
        ],
        out_specs=pl.BlockSpec((batch_tile, cout, hwp), lambda b: (b, 0, 0)),
        compiler_params=pltpu.CompilerParams(
            dimension_semantics=("parallel",),
            vmem_limit_bytes=vmem_limit),
        cost_estimate=pl.CostEstimate(flops=flops, transcendentals=0,
                                      bytes_accessed=bytes_accessed),
    )(x3, w1, b1c, w2f, b2c, w3, b3c, masks)

    out = out3[:, :, :hw].reshape(n, cout, h, w)
    return out.astype(x_nchw.dtype)


# --------------------------------------------------------------------------- #
# Deterministic synthetic parameters + pure-JAX reference
# --------------------------------------------------------------------------- #
def init_block_params(key, in_channels, out_channels, expansion=4):
    cmid = out_channels
    cout = out_channels * expansion
    ks = jax.random.split(key, 18)

    def bn_params(k1, k2, k3, k4, c):
        gamma = jax.random.uniform(k1, (c,), jnp.float32, 0.5, 1.5)
        beta = 0.1 * jax.random.normal(k2, (c,), jnp.float32)
        mean = 0.1 * jax.random.normal(k3, (c,), jnp.float32)
        var = jax.random.uniform(k4, (c,), jnp.float32, 0.5, 1.5)
        return gamma, beta, mean, var

    p = {}
    p["w1"] = 0.1 * jax.random.normal(ks[0], (cmid, in_channels), jnp.float32)
    p["b1"] = 0.05 * jax.random.normal(ks[1], (cmid,), jnp.float32)
    p["bn1"] = bn_params(ks[2], ks[3], ks[4], ks[5], cmid)
    p["w2"] = 0.1 * jax.random.normal(ks[6], (3, 3, cmid, cmid), jnp.float32)
    p["b2"] = 0.05 * jax.random.normal(ks[7], (cmid,), jnp.float32)
    p["bn2"] = bn_params(ks[8], ks[9], ks[10], ks[11], cmid)
    p["w3"] = 0.1 * jax.random.normal(ks[12], (cout, cmid), jnp.float32)
    p["b3"] = 0.05 * jax.random.normal(ks[13], (cout,), jnp.float32)
    p["bn3"] = bn_params(ks[14], ks[15], ks[16], ks[17], cout)
    return p


def block_reference(x, params, eps=1e-5):
    """Pure-JAX reference (inference BN), NCHW."""
    def bn(z, stats):
        g, b, m, v = stats
        return ((z - m[None, :, None, None]) /
                jnp.sqrt(v[None, :, None, None] + eps)
                * g[None, :, None, None] + b[None, :, None, None])

    def conv(x, w_oihw, b, padding):
        y = jax.lax.conv_general_dilated(
            x, w_oihw, window_strides=(1, 1), padding=padding,
            dimension_numbers=("NCHW", "OIHW", "NCHW"),
            precision=jax.lax.Precision.HIGHEST)
        return y + b[None, :, None, None]

    identity = x
    y = jax.nn.relu(bn(conv(x, params["w1"][:, :, None, None],
                            params["b1"], "VALID"), params["bn1"]))
    y = jax.nn.relu(bn(conv(y, jnp.transpose(params["w2"], (2, 3, 0, 1)),
                            params["b2"], "SAME"), params["bn2"]))
    y = bn(conv(y, params["w3"][:, :, None, None],
                params["b3"], "VALID"), params["bn3"])
    return jax.nn.relu(y + identity)


# --------------------------------------------------------------------------- #
if __name__ == "__main__":
    key = jax.random.PRNGKey(0)
    k_x, k_p, k_x2 = jax.random.split(key, 3)

    in_channels, out_channels = 32, 8      # expansion=4 -> Cout = 32 = Cin
    N, H, W = 2, 16, 16

    params = init_block_params(k_p, in_channels, out_channels)
    fwd = jax.jit(block_forward)

    # ---- test 1: f32, 128-aligned H*W ------------------------------------ #
    x = jax.random.normal(k_x, (N, in_channels, H, W), jnp.float32)
    out = fwd(x, params)
    jax.block_until_ready(out)
    assert out.shape == (N, out_channels * 4, H, W), out.shape
    assert bool(jnp.all(out >= 0.0))       # final ReLU
    ref = block_reference(x, params)
    err = float(jnp.max(jnp.abs(out - ref)))
    assert err < 2e-2, f"f32 max abs error vs reference: {err}"

    # ---- test 2: f32, non-128-multiple H*W (lane-padding path) ------------ #
    H2, W2 = 9, 9
    x2 = jax.random.normal(k_x2, (N, in_channels, H2, W2), jnp.float32)
    out2 = fwd(x2, params)
    jax.block_until_ready(out2)
    ref2 = block_reference(x2, params)
    err2 = float(jnp.max(jnp.abs(out2 - ref2)))
    assert err2 < 2e-2, f"padded f32 max abs error vs reference: {err2}"

    # ---- test 3: bf16 activations/weights, f32 accumulation --------------- #
    x_bf16 = x.astype(jnp.bfloat16)
    out_bf16 = fwd(x_bf16, params)
    jax.block_until_ready(out_bf16)
    ref_bf16 = block_reference(x_bf16.astype(jnp.float32), params)
    err_bf16 = float(jnp.max(jnp.abs(out_bf16.astype(jnp.float32) - ref_bf16)))
    assert err_bf16 < 2.5e-1, f"bf16 max abs error vs reference: {err_bf16}"

    print("KERNEL_OK")
</pallas_src>

<mosaic_0001>
module attributes {stable_mosaic.version = 11 : i64} {
  func.func @_bottleneck_kernel(%arg0: i32, %arg1: memref<1x32x256xf32, #tpu.memory_space<vmem>>, %arg2: memref<8x32xf32, #tpu.memory_space<vmem>>, %arg3: memref<8x1xf32, #tpu.memory_space<vmem>>, %arg4: memref<8x72xf32, #tpu.memory_space<vmem>>, %arg5: memref<8x1xf32, #tpu.memory_space<vmem>>, %arg6: memref<32x8xf32, #tpu.memory_space<vmem>>, %arg7: memref<32x1xf32, #tpu.memory_space<vmem>>, %arg8: memref<9x256xf32, #tpu.memory_space<vmem>>, %arg9: memref<1x32x256xf32, #tpu.memory_space<vmem>>) attributes {dimension_semantics = [#tpu.dimension_semantics<parallel>], iteration_bounds = array<i64: 2>, scalar_prefetch = 0 : i64, scratch_operands = 0 : i64, tpu.core_type = #tpu.core_type<tc>, window_params = [{transform_indices = @transform_0, window_bounds = array<i64: 1, 32, 256>}, {pipeline_mode = #tpu.pipeline_mode<synchronous>, transform_indices = @transform_1, window_bounds = array<i64: 8, 32>}, {pipeline_mode = #tpu.pipeline_mode<synchronous>, transform_indices = @transform_2, window_bounds = array<i64: 8, 1>}, {pipeline_mode = #tpu.pipeline_mode<synchronous>, transform_indices = @transform_3, window_bounds = array<i64: 8, 72>}, {pipeline_mode = #tpu.pipeline_mode<synchronous>, transform_indices = @transform_4, window_bounds = array<i64: 8, 1>}, {pipeline_mode = #tpu.pipeline_mode<synchronous>, transform_indices = @transform_5, window_bounds = array<i64: 32, 8>}, {pipeline_mode = #tpu.pipeline_mode<synchronous>, transform_indices = @transform_6, window_bounds = array<i64: 32, 1>}, {pipeline_mode = #tpu.pipeline_mode<synchronous>, transform_indices = @transform_7, window_bounds = array<i64: 9, 256>}, {transform_indices = @transform_8, window_bounds = array<i64: 1, 32, 256>}]} {
    %c0 = arith.constant 0 : index
    %c0_0 = arith.constant 0 : index
    %0 = vector.load %arg2[%c0, %c0_0] : memref<8x32xf32, #tpu.memory_space<vmem>>, vector<8x32xf32>
    %c0_1 = arith.constant 0 : index
    %c0_2 = arith.constant 0 : index
    %1 = vector.load %arg4[%c0_1, %c0_2] : memref<8x72xf32, #tpu.memory_space<vmem>>, vector<8x72xf32>
    %c0_3 = arith.constant 0 : index
    %c0_4 = arith.constant 0 : index
    %2 = vector.load %arg6[%c0_3, %c0_4] : memref<32x8xf32, #tpu.memory_space<vmem>>, vector<32x8xf32>
    %c0_5 = arith.constant 0 : index
    %c0_6 = arith.constant 0 : index
    %3 = vector.load %arg3[%c0_5, %c0_6] : memref<8x1xf32, #tpu.memory_space<vmem>>, vector<8x1xf32>
    %c0_7 = arith.constant 0 : index
    %c0_8 = arith.constant 0 : index
    %4 = vector.load %arg5[%c0_7, %c0_8] : memref<8x1xf32, #tpu.memory_space<vmem>>, vector<8x1xf32>
    %c0_9 = arith.constant 0 : index
    %c0_10 = arith.constant 0 : index
    %5 = vector.load %arg7[%c0_9, %c0_10] : memref<32x1xf32, #tpu.memory_space<vmem>>, vector<32x1xf32>
    %c0_11 = arith.constant 0 : index
    %c0_12 = arith.constant 0 : index
    %6 = vector.load %arg8[%c0_11, %c0_12] : memref<9x256xf32, #tpu.memory_space<vmem>>, vector<9x256xf32>
    %c0_13 = arith.constant 0 : index
    %c0_14 = arith.constant 0 : index
    %c0_15 = arith.constant 0 : index
    %7 = vector.load %arg1[%c0_13, %c0_14, %c0_15] : memref<1x32x256xf32, #tpu.memory_space<vmem>>, vector<1x32x256xf32>
    %8 = vector.shape_cast %7 : vector<1x32x256xf32> to vector<32x256xf32>
    %cst = arith.constant dense<0.000000e+00> : vector<8x256xf32>
    %9 = tpu.matmul %0, %8, %cst {dimension_numbers = #tpu.dot_dimension_numbers<[1], [0], [0], [1], [0, 0, 1, 1], [], []>} : vector<8x32xf32>, vector<32x256xf32>, vector<8x256xf32> -> vector<8x256xf32>
    %10 = vector.broadcast %3 : vector<8x1xf32> to vector<8x256xf32>
    %11 = arith.addf %9, %10 : vector<8x256xf32>
    %cst_16 = arith.constant 0.000000e+00 : f32
    %12 = vector.broadcast %cst_16 : f32 to vector<8x256xf32>
    %13 = arith.maximumf %11, %12 : vector<8x256xf32>
    %c17_i32 = arith.constant 17 : i32
    %14 = tpu.dynamic_rotate %13 by %c17_i32 dim 1 : vector<8x256xf32>, i32 -> vector<8x256xf32>
    %15 = vector.extract_strided_slice %6 {offsets = [0, 0], sizes = [1, 256], strides = [1, 1]} : vector<9x256xf32> to vector<1x256xf32>
    %16 = vector.broadcast %15 : vector<1x256xf32> to vector<8x256xf32>
    %17 = arith.mulf %14, %16 : vector<8x256xf32>
    %c16_i32 = arith.constant 16 : i32
    %18 = tpu.dynamic_rotate %13 by %c16_i32 dim 1 : vector<8x256xf32>, i32 -> vector<8x256xf32>
    %19 = vector.extract_strided_slice %6 {offsets = [1, 0], sizes = [1, 256], strides = [1, 1]} : vector<9x256xf32> to vector<1x256xf32>
    %20 = vector.broadcast %19 : vector<1x256xf32> to vector<8x256xf32>
    %21 = arith.mulf %18, %20 : vector<8x256xf32>
    %c15_i32 = arith.constant 15 : i32
    %22 = tpu.dynamic_rotate %13 by %c15_i32 dim 1 : vector<8x256xf32>, i32 -> vector<8x256xf32>
    %23 = vector.extract_strided_slice %6 {offsets = [2, 0], sizes = [1, 256], strides = [1, 1]} : vector<9x256xf32> to vector<1x256xf32>
    %24 = vector.broadcast %23 : vector<1x256xf32> to vector<8x256xf32>
    %25 = arith.mulf %22, %24 : vector<8x256xf32>
    %c1_i32 = arith.constant 1 : i32
    %26 = tpu.dynamic_rotate %13 by %c1_i32 dim 1 : vector<8x256xf32>, i32 -> vector<8x256xf32>
    %27 = vector.extract_strided_slice %6 {offsets = [3, 0], sizes = [1, 256], strides = [1, 1]} : vector<9x256xf32> to vector<1x256xf32>
    %28 = vector.broadcast %27 : vector<1x256xf32> to vector<8x256xf32>
    %29 = arith.mulf %26, %28 : vector<8x256xf32>
    %c255_i32 = arith.constant 255 : i32
    %30 = tpu.dynamic_rotate %13 by %c255_i32 dim 1 : vector<8x256xf32>, i32 -> vector<8x256xf32>
    %31 = vector.extract_strided_slice %6 {offsets = [5, 0], sizes = [1, 256], strides = [1, 1]} : vector<9x256xf32> to vector<1x256xf32>
    %32 = vector.broadcast %31 : vector<1x256xf32> to vector<8x256xf32>
    %33 = arith.mulf %30, %32 : vector<8x256xf32>
    %c241_i32 = arith.constant 241 : i32
    %34 = tpu.dynamic_rotate %13 by %c241_i32 dim 1 : vector<8x256xf32>, i32 -> vector<8x256xf32>
    %35 = vector.extract_strided_slice %6 {offsets = [6, 0], sizes = [1, 256], strides = [1, 1]} : vector<9x256xf32> to vector<1x256xf32>
    %36 = vector.broadcast %35 : vector<1x256xf32> to vector<8x256xf32>
    %37 = arith.mulf %34, %36 : vector<8x256xf32>
    %c240_i32 = arith.constant 240 : i32
    %38 = tpu.dynamic_rotate %13 by %c240_i32 dim 1 : vector<8x256xf32>, i32 -> vector<8x256xf32>
    %39 = vector.extract_strided_slice %6 {offsets = [7, 0], sizes = [1, 256], strides = [1, 1]} : vector<9x256xf32> to vector<1x256xf32>
    %40 = vector.broadcast %39 : vector<1x256xf32> to vector<8x256xf32>
    %41 = arith.mulf %38, %40 : vector<8x256xf32>
    %c239_i32 = arith.constant 239 : i32
    %42 = tpu.dynamic_rotate %13 by %c239_i32 dim 1 : vector<8x256xf32>, i32 -> vector<8x256xf32>
    %43 = vector.extract_strided_slice %6 {offsets = [8, 0], sizes = [1, 256], strides = [1, 1]} : vector<9x256xf32> to vector<1x256xf32>
    %44 = vector.broadcast %43 : vector<1x256xf32> to vector<8x256xf32>
    %45 = arith.mulf %42, %44 : vector<8x256xf32>
    %46 = tpu.concatenate %17, %21, %25, %29, %13, %33, %37, %41, %45 in 0 : vector<8x256xf32>, vector<8x256xf32>, vector<8x256xf32>, vector<8x256xf32>, vector<8x256xf32>, vector<8x256xf32>, vector<8x256xf32>, vector<8x256xf32>, vector<8x256xf32> -> vector<72x256xf32>
    %cst_17 = arith.constant dense<0.000000e+00> : vector<8x256xf32>
    %47 = tpu.matmul %1, %46, %cst_17 {dimension_numbers = #tpu.dot_dimension_numbers<[1], [0], [0], [1], [0, 0, 1, 1], [], []>} : vector<8x72xf32>, vector<72x256xf32>, vector<8x256xf32> -> vector<8x256xf32>
    %48 = vector.broadcast %4 : vector<8x1xf32> to vector<8x256xf32>
    %49 = arith.addf %47, %48 : vector<8x256xf32>
    %cst_18 = arith.constant 0.000000e+00 : f32
    %50 = vector.broadcast %cst_18 : f32 to vector<8x256xf32>
    %51 = arith.maximumf %49, %50 : vector<8x256xf32>
    %cst_19 = arith.constant dense<0.000000e+00> : vector<32x256xf32>
    %52 = tpu.matmul %2, %51, %cst_19 {dimension_numbers = #tpu.dot_dimension_numbers<[1], [0], [0], [1], [0, 0, 1, 1], [], []>} : vector<32x8xf32>, vector<8x256xf32>, vector<32x256xf32> -> vector<32x256xf32>
    %53 = vector.broadcast %5 : vector<32x1xf32> to vector<32x256xf32>
    %54 = arith.addf %52, %53 : vector<32x256xf32>
    %55 = arith.addf %54, %8 : vector<32x256xf32>
    %cst_20 = arith.constant 0.000000e+00 : f32
    %56 = vector.broadcast %cst_20 : f32 to vector<32x256xf32>
    %57 = arith.maximumf %55, %56 : vector<32x256xf32>
    %c0_21 = arith.constant 0 : index
    %c0_22 = arith.constant 0 : index
    %c0_23 = arith.constant 0 : index
    %58 = vector.load %arg9[%c0_21, %c0_22, %c0_23] : memref<1x32x256xf32, #tpu.memory_space<vmem>>, vector<1x32x256xf32>
    %59 = vector.shape_cast %58 : vector<1x32x256xf32> to vector<32x256xf32>
    %60 = vector.shape_cast %57 : vector<32x256xf32> to vector<1x32x256xf32>
    tpu.vector_store %arg9[%c0_21, %c0_22, %c0_23], %60 {strides = array<i32>} : memref<1x32x256xf32, #tpu.memory_space<vmem>>, vector<1x32x256xf32>,
    return
  }
  func.func @transform_0(%arg0: i32) -> (i32, i32, i32) {
    %c0_i32 = arith.constant 0 : i32
    %c0_i32_0 = arith.constant 0 : i32
    %c0_i32_1 = arith.constant 0 : i32
    return %arg0, %c0_i32, %c0_i32_0 : i32, i32, i32
  }
  func.func @transform_1(%arg0: i32) -> (i32, i32) {
    %c0_i32 = arith.constant 0 : i32
    %c0_i32_0 = arith.constant 0 : i32
    %c0_i32_1 = arith.constant 0 : i32
    return %c0_i32, %c0_i32_0 : i32, i32
  }
  func.func @transform_2(%arg0: i32) -> (i32, i32) {
    %c0_i32 = arith.constant 0 : i32
    %c0_i32_0 = arith.constant 0 : i32
    %c0_i32_1 = arith.constant 0 : i32
    return %c0_i32, %c0_i32_0 : i32, i32
  }
  func.func @transform_3(%arg0: i32) -> (i32, i32) {
    %c0_i32 = arith.constant 0 : i32
    %c0_i32_0 = arith.constant 0 : i32
    %c0_i32_1 = arith.constant 0 : i32
    return %c0_i32, %c0_i32_0 : i32, i32
  }
  func.func @transform_4(%arg0: i32) -> (i32, i32) {
    %c0_i32 = arith.constant 0 : i32
    %c0_i32_0 = arith.constant 0 : i32
    %c0_i32_1 = arith.constant 0 : i32
    return %c0_i32, %c0_i32_0 : i32, i32
  }
  func.func @transform_5(%arg0: i32) -> (i32, i32) {
    %c0_i32 = arith.constant 0 : i32
    %c0_i32_0 = arith.constant 0 : i32
    %c0_i32_1 = arith.constant 0 : i32
    return %c0_i32, %c0_i32_0 : i32, i32
  }
  func.func @transform_6(%arg0: i32) -> (i32, i32) {
    %c0_i32 = arith.constant 0 : i32
    %c0_i32_0 = arith.constant 0 : i32
    %c0_i32_1 = arith.constant 0 : i32
    return %c0_i32, %c0_i32_0 : i32, i32
  }
  func.func @transform_7(%arg0: i32) -> (i32, i32) {
    %c0_i32 = arith.constant 0 : i32
    %c0_i32_0 = arith.constant 0 : i32
    %c0_i32_1 = arith.constant 0 : i32
    return %c0_i32, %c0_i32_0 : i32, i32
  }
  func.func @transform_8(%arg0: i32) -> (i32, i32, i32) {
    %c0_i32 = arith.constant 0 : i32
    %c0_i32_0 = arith.constant 0 : i32
    %c0_i32_1 = arith.constant 0 : i32
    return %arg0, %c0_i32, %c0_i32_0 : i32, i32, i32
  }
}

</mosaic_0001>

<bundles_post_ra>
// kernel: block_forward.1
= control target key start
LH: loop header
LB: loop body
LE: loop exit
PB: predicated region body
PF: predicated region fallthrough
CT: control target
= control target key end

     0   :  { %s961_s27 = smov 0   ;;  %s1152_s0 = inlined_call_operand.vmem [shape: f32[2,32,256], index: 0, kind: input, shape index: {}]   ;;  %s1153_s1 = inlined_call_operand.vmem [shape: f32[8,32], index: 1, kind: input, shape index: {}]   ;;  %s1154_s2 = inlined_call_operand.vmem [shape: f32[8,1], index: 2, kind: input, shape index: {}]   ;;  %s1155_s3 = inlined_call_operand.vmem [shape: f32[8,72], index: 3, kind: input, shape index: {}]   ;;  %s1156_s4 = inlined_call_operand.vmem [shape: f32[8,1], index: 4, kind: input, shape index: {}]   ;;  %s1157_s5 = inlined_call_operand.vmem [shape: f32[32,8], index: 5, kind: input, shape index: {}]   ;;  %s1158_s6 = inlined_call_operand.vmem [shape: f32[32,1], index: 6, kind: input, shape index: {}]   ;;  %s1159_s7 = inlined_call_operand.vmem [shape: f32[9,256], index: 7, kind: input, shape index: {}]   ;;  %s1160_s8 = inlined_call_operand.vmem [shape: f32[2,32,256], index: 8, kind: output, shape index: {}]  }
   0x1 LB: > { %s833_s28 = sadd.s32 4294967295, %s904_s27   ;;  %p837_p0 = scmp.ge.s32.totalorder %s904_s27, 1  ;;  %s904_s27 = sphi %s961_s27, %s18_s27  }
   0x2   : > { %p262_p1 = scmp.lt.s32.totalorder %s904_s27, 3 }
   0x4   : > { %p263_p2 = pnand %p837_p0, %p262_p1 }
   0x5   : > { %p296_p3 = scmp.lt.s32.totalorder (!%p263_p2), %s833_s28, 1  ;;  %v312_v0 = vld [vmem:[%s1154_s2] sm:$0xff] (!%p263_p2)  ;;  %v906_v1 = vmov (!%p263_p2), 0.0   ;;  %v907_v2 = vmov (!%p263_p2), 0   ;;  %vm335_vm0 = vcmask (!%p263_p2), 261120   ;;  %s908_s15 = smov (!%p263_p2), 16   ;;  %v416_v28 = vlaneseq (!%p263_p2) }
   0x6   : > { %266 = sbr.rel (%p263_p2) target bundleno = 844 (0x34c), region = 52  ;;  %403 = vmatprep.mubr.f32.mxu0 (!%p263_p2), %v906_v1  ;;  %896 = vset.pattern.permute.xlu0 (!%p263_p2), %v907_v2  ;;  %v306_v15 = vld [vmem:[%s1153_s1] sm:$0xff] (!%p263_p2)  ;;  %s909_s16 = smov (!%p263_p2), 17   ;;  %v316_v24 = vld [vmem:[%s1158_s6 + $0x10] sm:$0xff] (!%p263_p2)  ;;  %v315_v26 = vld [vmem:[%s1158_s6 + $0x8] sm:$0xff] (!%p263_p2)  ;;  %vm555_vm9 = vcmask (!%p263_p2), 588800  }
   0x7   : > { %332 = vperm.xlu0 (!%p263_p2), %896, %v312_v0   ;;  %623 = vmatprep.mubr.f32.mxu1 (!%p263_p2), %v906_v1  ;;  %s910_s17 = smov (!%p263_p2), 15   ;;  %s911_s18 = smov (!%p263_p2), 1   ;;  %v314_v23 = vld [vmem:[%s1158_s6] sm:$0xff] (!%p263_p2)  ;;  %v317_v27 = vld [vmem:[%s1158_s6 + $0x18] sm:$0xff] (!%p263_p2)  ;;  %v1045_v31 = vshrl.u32 (!%p263_p2), %v416_v28, 7  ;;  %v1047_v32 = vand.u32 (!%p263_p2), 127, %v416_v28 }
   0x8   : > { %897 = vset.pattern.permute.xlu1 (!%p263_p2), %v907_v2  ;;  %s912_s19 = smov (!%p263_p2), 127   ;;  %s913_s20 = smov (!%p263_p2), 113   ;;  %v313_v25 = vld [vmem:[%s1156_s4] sm:$0xff] (!%p263_p2)  ;;  %v1058_v37 = vld [vmem:[%s1159_s7 + $0x8] sm:$0xff] (!%p263_p2)  ;;  %vm652_vm10 = vcmask (!%p263_p2), 64512  }
   0x9   : > { %s914_s21 = smov (!%p263_p2), 112   ;;  %s915_s22 = smov (!%p263_p2), 111   ;;  %v440_v34 = vsub.s32 (!%p263_p2), 1, %v1045_v31  ;;  %v1053_v36 = vld [vmem:[%s1159_s7] sm:$0xff] (!%p263_p2)  ;;  %vm435_vm1 = vcmp.lt.s32.totalorder (!%p263_p2), %v1047_v32, 16  ;;  %v423_v38 = vsub.s32 (!%p263_p2), 0, %v1045_v31 }
   0xa   : > { %v474_v39 = vsub.s32 (!%p263_p2), 3, %v1045_v31  ;;  %v457_v40 = vsub.s32 (!%p263_p2), 2, %v1045_v31  ;;  %v491_v44 = vsub.s32 (!%p263_p2), 5, %v1045_v31  ;;  %vm452_vm2 = vcmp.lt.s32.totalorder (!%p263_p2), %v1047_v32, 15 }
   0xb   : > { %v441_v41 = vrot.slane (!%p263_p2), %v1053_v36, %v440_v34  ;;  %v445_v45 = vrot.slane (!%p263_p2), %v1058_v37, %v440_v34  ;;  %vm418_vm3 = vcmp.lt.s32.totalorder (!%p263_p2), %v1047_v32, 17  ;;  %v424_v48 = vrot.slane (!%p263_p2), %v1053_v36, %v423_v38 }
   0xc   : > { %vm469_vm4 = vcmp.lt.s32.totalorder (!%p263_p2), %v1047_v32, 1  ;;  %v479_v49 = vrot.slane (!%p263_p2), %v1058_v37, %v474_v39  ;;  %v428_v50 = vrot.slane (!%p263_p2), %v1058_v37, %v423_v38  ;;  %v462_v51 = vrot.slane (!%p263_p2), %v1058_v37, %v457_v40 }
   0xd   : > { %s1162_s28 = smov (!%p296_p3, %s833_s28), 1  ;;  %v475_v52 = vrot.slane %v1053_v36, %v474_v39  ;;  %vm486_vm5 = vcmp.lt.s32.totalorder %v1047_v32, 127  ;;  %v496_v56 = vrot.slane %v1058_v37, %v491_v44  ;;  %vm503_vm6 = vcmp.lt.s32.totalorder %v1047_v32, 113 }
   0xe   : > { %s852_s9 = sshll.u32 %s1162_s28, 6  ;;  %vm520_vm7 = vcmp.lt.s32.totalorder %v1047_v32, 112  ;;  %vm537_vm8 = vcmp.lt.s32.totalorder %v1047_v32, 111 }
   0xf   : > { %s300_s12 = scalar_lea.vmem %s1152_s0, %s852_s9 }
  0x10   : > { %v982_v3 = vld [vmem:[%s300_s12 + $0x8] sm:$0xff]  ;;  %v984_v4 = vld [vmem:[%s300_s12 + $0x18] sm:$0xff]  ;;  %v986_v5 = vld [vmem:[%s300_s12] sm:$0xff] }
  0x11   : > { %v854_v6 = vpack.c.bf16 %v984_v4, %v982_v3  ;;  %v990_v7 = vld [vmem:[%s300_s12 + $0x10] sm:$0xff]  ;;  %v992_v8 = vld [vmem:[%s300_s12 + $0x28] sm:$0xff]  ;;  %v994_v9 = vld [vmem:[%s300_s12 + $0x38] sm:$0xff] }
  0x12   : > { %v856_v10 = vpack.c.bf16 %v990_v7, %v986_v5  ;;  %v858_v11 = vpack.c.bf16 %v994_v9, %v992_v8  ;;  %v1000_v12 = vld [vmem:[%s300_s12 + $0x20] sm:$0xff]  ;;  %v1002_v13 = vld [vmem:[%s300_s12 + $0x30] sm:$0xff] }
  0x13   : > { %855 = vmatprep.subr.bf16.mxu0 %v854_v6  ;;  %v860_v14 = vpack.c.bf16 %v1002_v13, %v1000_v12  ;;  %v458_v6 = vrot.slane %v1053_v36, %v457_v40 }
  0x14   : > { %857 = vmatpush1.bf16.msra.mxu0 %v856_v10 }
  0x15   : > { %859 = vmatprep.subr.bf16.mxu0 %v858_v11 }
  0x18   : > { %861 = vmatpush1.bf16.msra.mxu0 %v860_v14 }
  0x1b   : > { %842 = vmatmul.mubr.msk.f32.vlgmr.msra.gmra.mrb[0].mxu0 %vm335_vm0, %v306_v15 }
  0x1c   : > { %729 = vmatprep.mubr.f32.mxu0 %v906_v1 }
  0x86   : > { %v333_v16 = vpop.permute.xlu0 %332 }
  0xee   : > { %v405_v17 = vpop.f32.mrb[0].mxu0 }
  0xef   : > { %v406_v18 = vadd.f32 %v405_v17, %v333_v16  ;;  %v407_v19 = vpop.f32.mrb[1].mxu0 }
  0xf0   : > { %v408_v21 = vadd.f32 %v407_v19, %v333_v16  ;;  %v492_v19 = vrot.slane %v1053_v36, %v491_v44 }
  0xf1   : > { %v1010_v20 = vmax.f32 %v406_v18, 0.0 }
  0xf2   : > { %v1014_v22 = vmax.f32 %v408_v21, 0.0 }
  0xf3   : > { %431 = vrot.lane.b32.xlu1 %v1010_v20, %s908_s15  ;;  %412 = vrot.lane.b32.xlu0 %v1010_v20, %s909_s16 }
  0xf7   : > { %448 = vrot.lane.b32.xlu1 %v1010_v20, %s910_s17  ;;  %433 = vrot.lane.b32.xlu0 %v1014_v22, %s908_s15  ;;  %s1132_s15 = scalar_lea.vmem %s1160_s8, %s852_s9 }
  0xfb   : > { %465 = vrot.lane.b32.xlu1 %v1010_v20, %s911_s18  ;;  %450 = vrot.lane.b32.xlu0 %v1014_v22, %s910_s17 }
  0xff   : > { %414 = vrot.lane.b32.xlu1 %v1014_v22, %s909_s16  ;;  %467 = vrot.lane.b32.xlu0 %v1014_v22, %s911_s18 }
 0x103   : > { %482 = vrot.lane.b32.xlu1 %v1010_v20, %s912_s19  ;;  %484 = vrot.lane.b32.xlu0 %v1014_v22, %s912_s19 }
 0x107   : > { %499 = vrot.lane.b32.xlu1 %v1010_v20, %s913_s20  ;;  %501 = vrot.lane.b32.xlu0 %v1014_v22, %s913_s20 }
 0x10b   : > { %516 = vrot.lane.b32.xlu1 %v1010_v20, %s914_s21  ;;  %518 = vrot.lane.b32.xlu0 %v1014_v22, %s914_s21 }
 0x10f   : > { %533 = vrot.lane.b32.xlu1 %v1010_v20, %s915_s22  ;;  %535 = vrot.lane.b32.xlu0 %v1014_v22, %s915_s22 }
 0x113   : > { %634 = vperm.xlu0 %896, %v314_v23   ;;  %552 = vperm.xlu1 %897, %v313_v25   ;;  %v508_v23 = vsub.s32 6, %v1045_v31 }
 0x115   : > { %v509_v34 = vrot.slane %v1053_v36, %v508_v23 }
 0x117   : > { %644 = vperm.xlu0 %896, %v316_v24   ;;  %639 = vperm.xlu1 %897, %v315_v26  }
 0x11b   : > { %649 = vperm.xlu1 %897, %v317_v27   ;;  %v525_v27 = vsub.s32 7, %v1045_v31 }
 0x11d   : > { %v526_v40 = vrot.slane %v1053_v36, %v525_v27  ;;  %v530_v31 = vrot.slane %v1058_v37, %v525_v27  ;;  %v844_v36 = vld [vmem:[%s1159_s7 + $0x18] ss:$0 sm:$0xff] }
 0x165   : > { %v432_v29 = vpop.permute.xlu1 %431  ;;  %v413_v30 = vpop.permute.xlu0 %412 }
 0x169   : > { %v449_v33 = vpop.permute.xlu1 %448  ;;  %v434_v35 = vpop.permute.xlu0 %433 }
 0x16a   : > { %v436_v46 = vsel %vm435_vm1, %v432_v29, %v434_v35  ;;  %v437_v47 = vsel %vm435_vm1, %v434_v35, %v432_v29  ;;  %v513_v35 = vrot.slane %v1058_v37, %v508_v23 }
 0x16b   : > { %v446_v53 = vmul.f32 %v441_v41, %v437_v47  ;;  %v447_v57 = vmul.f32 %v445_v45, %v436_v46 }
 0x16d   : > { %v466_v42 = vpop.permute.xlu1 %465  ;;  %v451_v43 = vpop.permute.xlu0 %450 }
 0x16e   : > { %v453_v58 = vsel %vm452_vm2, %v449_v33, %v451_v43  ;;  %v454_v10 = vsel %vm452_vm2, %v451_v43, %v449_v33 }
 0x16f   : > { %v464_v11 = vmul.f32 %v462_v51, %v453_v58  ;;  %v463_v28 = vmul.f32 %v458_v6, %v454_v10  ;;  %v309_v6 = vld [vmem:[%s1157_s5 + $0x8] sm:$0xff]  ;;  %v310_v10 = vld [vmem:[%s1157_s5 + $0x10] sm:$0xff] }
 0x171   : > { %v415_v54 = vpop.permute.xlu1 %414  ;;  %v468_v55 = vpop.permute.xlu0 %467 }
 0x172   : > { %v419_v59 = vsel %vm418_vm3, %v413_v30, %v415_v54  ;;  %v420_v60 = vsel %vm418_vm3, %v415_v54, %v413_v30  ;;  %v470_v61 = vsel %vm469_vm4, %v466_v42, %v468_v55  ;;  %v471_v63 = vsel %vm469_vm4, %v468_v55, %v466_v42 }
 0x173   : > { %v429_v62 = vmul.f32 %v424_v48, %v420_v60  ;;  %v481_v0 = vmul.f32 %v479_v49, %v470_v61  ;;  %v430_v2 = vmul.f32 %v428_v50, %v419_v59  ;;  %v480_v18 = vmul.f32 %v475_v52, %v471_v63 }
 0x175   : > { %v483_v14 = vpop.permute.xlu1 %482  ;;  %v485_v15 = vpop.permute.xlu0 %484  ;;  %v862_v16 = vpack.c.bf16 %v447_v57, %v430_v2  ;;  %v864_v17 = vpack.c.bf16 %v446_v53, %v429_v62  ;;  %v866_v26 = vpack.c.bf16 %v481_v0, %v464_v11  ;;  %v868_v38 = vpack.c.bf16 %v480_v18, %v463_v28  ;;  %v307_v57 = vld [vmem:[%s1155_s3] sm:$0xff]  ;;  %v311_v11 = vld [vmem:[%s1157_s5 + $0x18] sm:$0xff] }
 0x176   : > { %v488_v21 = vsel %vm486_vm5, %v485_v15, %v483_v14  ;;  %v487_v24 = vsel %vm486_vm5, %v483_v14, %v485_v15  ;;  %v308_v2 = vld [vmem:[%s1157_s5] sm:$0xff] }
 0x177   : > { %v498_v25 = vmul.f32 %v496_v56, %v488_v21  ;;  %863 = vmatprep.subr.bf16.mxu1 %v862_v16  ;;  %v497_v33 = vmul.f32 %v492_v19, %v487_v24 }
 0x178   : > { %865 = vmatpush1.bf16.msra.mxu1 %v864_v17 }
 0x179   : > { %v500_v29 = vpop.permute.xlu1 %499  ;;  %867 = vmatprep.subr.bf16.mxu1 %v866_v26  ;;  %v502_v30 = vpop.permute.xlu0 %501  ;;  %v870_v39 = vpack.c.bf16 %v498_v25, %v1014_v22  ;;  %v872_v47 = vpack.c.bf16 %v497_v33, %v1010_v20  ;;  %v843_v20 = vld [vmem:[%s1159_s7 + $0x10] ss:$0 sm:$0xff] }
 0x17a   : > { %v504_v41 = vsel %vm503_vm6, %v500_v29, %v502_v30  ;;  %v505_v42 = vsel %vm503_vm6, %v502_v30, %v500_v29 }
 0x17b   : > { %v514_v48 = vmul.f32 %v509_v34, %v504_v41  ;;  %v515_v22 = vmul.f32 %v513_v35, %v505_v42 }
 0x17c   : > { %869 = vmatpush1.bf16.msra.mxu1 %v868_v38 }
 0x17d   : > { %v517_v43 = vpop.permute.xlu1 %516  ;;  %871 = vmatprep.subr.bf16.mxu1 %v870_v39  ;;  %v519_v44 = vpop.permute.xlu0 %518 }
 0x17e   : > { %v521_v45 = vsel %vm520_vm7, %v517_v43, %v519_v44  ;;  %v522_v46 = vsel %vm520_vm7, %v519_v44, %v517_v43 }
 0x17f   : > { %v531_v49 = vmul.f32 %v526_v40, %v521_v45  ;;  %v532_v50 = vmul.f32 %v530_v31, %v522_v46 }
 0x180   : > { %873 = vmatpush1.bf16.msra.mxu1 %v872_v47 }
 0x181   : > { %v534_v37 = vpop.permute.xlu1 %533  ;;  %v536_v51 = vpop.permute.xlu0 %535  ;;  %v874_v52 = vpack.c.bf16 %v532_v50, %v515_v22  ;;  %v876_v53 = vpack.c.bf16 %v531_v49, %v514_v48 }
 0x182   : > { %v539_v54 = vsel %vm537_vm8, %v536_v51, %v534_v37  ;;  %v538_v55 = vsel %vm537_vm8, %v534_v37, %v536_v51 }
 0x183   : > { %v549_v32 = vmul.f32 %v844_v36, %v539_v54  ;;  %875 = vmatprep.subr.bf16.mxu1 %v874_v52  ;;  %v548_v56 = vmul.f32 %v843_v20, %v538_v55 }
 0x184   : > { %877 = vmatpush1.bf16.msra.mxu1 %v876_v53 }
 0x185   : > { %575 = vmatprep.subr.mxu1 %v549_v32 }
 0x188   : > { %576 = vmatpush1.msra.mxu1 %v548_v56 }
 0x189   : > { %845 = vmatmul.mubr.msk.f32.vlgmr.msra.gmra.mrb[0].mxu1 %vm555_vm9, %v307_v57 }
 0x192   : > { %v553_v58 = vpop.permute.xlu1 %552  ;;  %v635_v14 = vpop.permute.xlu0 %634 }
 0x196   : > { %v645_v29 = vpop.permute.xlu0 %644 }
 0x25c   : > { %v625_v59 = vpop.f32.mrb[0].mxu1 }
 0x25d   : > { %v626_v60 = vadd.f32 %v625_v59, %v553_v58  ;;  %v627_v61 = vpop.f32.mrb[1].mxu1 }
 0x25e   : > { %v628_v62 = vadd.f32 %v627_v61, %v553_v58 }
 0x25f   : > { %v630_v0 = vmax.f32 %v626_v60, 0.0 }
 0x260   : > { %v631_v63 = vmax.f32 %v628_v62, 0.0 }
 0x262   : > { %665 = vmatprep.subr.mxu0 %v631_v63 }
 0x263   : > { %666 = vmatpush1.msra.mxu0 %v630_v0 }
 0x264   : > { %846 = vmatmul.mubr.msk.f32.vlgmr.msra.gmra.mrb[2].mxu0 %vm652_vm10, %v308_v2 }
 0x265   : > { %735 = vmatprep.mubr.f32.mxu0 %v906_v1 }
 0x268   : > { %847 = vmatmul.mubr.msk.f32.gmra.mrb[4].mxu0 %vm652_vm10, %v309_v6 }
 0x269   : > { %741 = vmatprep.mubr.f32.mxu0 %v906_v1 }
 0x26c   : > { %848 = vmatmul.mubr.msk.f32.gmra.mrb[6].mxu0 %vm652_vm10, %v310_v10 }
 0x26d   : > { %747 = vmatprep.mubr.f32.mxu0 %v906_v1  ;;  %v640_v1 = vpop.permute.xlu1 %639 }
 0x270   : > { %849 = vmatmul.mubr.msk.f32.gmra.mrb[8].mxu0 %vm652_vm10, %v311_v11 }
 0x271   : > { %v650_v31 = vpop.permute.xlu1 %649 }
 0x337   : > { %v731_v15 = vpop.f32.mrb[2].mxu0 }
 0x338   : > { %v732_v16 = vadd.f32 %v731_v15, %v635_v14  ;;  %v733_v17 = vpop.f32.mrb[3].mxu0 }
 0x339   : > { %v734_v18 = vadd.f32 %v733_v17, %v635_v14 }
 0x33a   : > { %v754_v19 = vadd.f32 %v732_v16, %v986_v5 }
 0x33b   : > { %v755_v21 = vadd.f32 %v734_v18, %v982_v3  ;;  %v737_v23 = vpop.f32.mrb[4].mxu0 }
 0x33c   : > { %v762_v24 = vmax.f32 %v754_v19, 0.0  ;;  %v738_v25 = vadd.f32 %v737_v23, %v640_v1  ;;  %v739_v26 = vpop.f32.mrb[5].mxu0 }
 0x33d   : > { %v763_v27 = vmax.f32 %v755_v21, 0.0  ;;  %v740_v28 = vadd.f32 %v739_v26, %v640_v1 }
 0x33e   : > { %770 = vst [vmem:[%s1132_s15] sm:$0xff] %v762_v24  ;;  %v756_v5 = vadd.f32 %v738_v25, %v990_v7 }
 0x33f   : > { %771 = vst [vmem:[%s1132_s15 + $0x8] sm:$0xff] %v763_v27  ;;  %v757_v30 = vadd.f32 %v740_v28, %v984_v4  ;;  %v743_v33 = vpop.f32.mrb[6].mxu0 }
 0x340   : > { %v764_v34 = vmax.f32 %v756_v5, 0.0  ;;  %v744_v35 = vadd.f32 %v743_v33, %v645_v29  ;;  %v745_v3 = vpop.f32.mrb[7].mxu0 }
 0x341   : > { %v765_v38 = vmax.f32 %v757_v30, 0.0  ;;  %v746_v39 = vadd.f32 %v745_v3, %v645_v29 }
 0x342   : > { %772 = vst [vmem:[%s1132_s15 + $0x10] sm:$0xff] %v764_v34  ;;  %v758_v40 = vadd.f32 %v744_v35, %v1000_v12 }
 0x343   : > { %773 = vst [vmem:[%s1132_s15 + $0x18] sm:$0xff] %v765_v38  ;;  %v759_v7 = vadd.f32 %v746_v39, %v992_v8  ;;  %v749_v41 = vpop.f32.mrb[8].mxu0 }
 0x344   : > { %v766_v42 = vmax.f32 %v758_v40, 0.0  ;;  %v750_v4 = vadd.f32 %v749_v41, %v650_v31  ;;  %v751_v43 = vpop.f32.mrb[9].mxu0 }
 0x345   : > { %v767_v44 = vmax.f32 %v759_v7, 0.0  ;;  %v752_v45 = vadd.f32 %v751_v43, %v650_v31 }
 0x346   : > { %774 = vst [vmem:[%s1132_s15 + $0x20] sm:$0xff] %v766_v42  ;;  %v760_v46 = vadd.f32 %v750_v4, %v1002_v13 }
 0x347   : > { %775 = vst [vmem:[%s1132_s15 + $0x28] sm:$0xff] %v767_v44  ;;  %v761_v47 = vadd.f32 %v752_v45, %v994_v9 }
 0x348   : > { %v768_v48 = vmax.f32 %v760_v46, 0.0 }
 0x349   : > { %v769_v12 = vmax.f32 %v761_v47, 0.0 }
 0x34a   : > { %776 = vst [vmem:[%s1132_s15 + $0x30] sm:$0xff] %v768_v48 }
 0x34b   : > { %777 = vst [vmem:[%s1132_s15 + $0x38] sm:$0xff] %v769_v12 }
 0x34c PF: > { %s18_s27 = sadd.s32 1, %s904_s27  }
 0x34d   : > { %p15_p4 = scmp.ge.s32.totalorder %s18_s27, 4  }
 0x34f   :  { %17 = sbr.rel (!%p15_p4) target bundleno = 1 (0x1), region = 82 }

</bundles_post_ra>
